<compile_context>
chip_gen: v6e
topology: v6e:2x2x1
jax: 0.10.0
libtpu: 0.0.40
codegen_flags: <defaults>
</compile_context>

<pallas_src>
import jax
import jax.numpy as jnp
from jax.experimental import pallas as pl
from jax.experimental.pallas import tpu as pltpu


def _mlp_kernel(x_ref,
                w1_ref, b1_ref,
                w2_ref, b2_ref,
                w3_ref, b3_ref,
                w4_ref, b4_ref,
                w5_ref, b5_ref,
                w6_ref, b6_ref,
                o_ref):
    # Activations stay f32 between layers; only MXU operands are cast to bf16.
    h = x_ref[...]

    def linear_relu(h, w_ref, b_ref):
        y = jnp.dot(h.astype(w_ref.dtype), w_ref[...],
                    preferred_element_type=jnp.float32)
        y = y + b_ref[...]            # f32 bias add
        return jnp.maximum(y, 0.0)    # f32 ReLU

    h = linear_relu(h, w1_ref, b1_ref)   # input_size -> hidden
    h = linear_relu(h, w2_ref, b2_ref)   # hidden     -> hidden
    h = linear_relu(h, w3_ref, b3_ref)   # hidden     -> 256
    h = linear_relu(h, w4_ref, b4_ref)   # 256        -> 128
    h = linear_relu(h, w5_ref, b5_ref)   # 128        -> 64

    # Final 64 -> 1 layer: elementwise multiply against the weight row then
    # lane-reduce (VPU/XLU) instead of an N=1 MXU matmul.
    w6_row = w6_ref[...].astype(jnp.float32)            # [1, 64]
    out = jnp.sum(h * w6_row, axis=-1, keepdims=True)   # [bm, 1] f32
    out = out + b6_ref[...]                              # [1, 1] broadcast
    o_ref[...] = out.astype(o_ref.dtype)


def _default_block_batch(batch):
    # Single block when batch is small; otherwise 512-row tiles (multiple of
    # the 8-row f32 sublane) so the batch grid pipelines.
    if batch <= 512:
        return ((batch + 7) // 8) * 8
    return 512


def simple_mlp_forward(x, params, *, block_batch=None):
    """x: [batch, input_size] f32.

    params: 5 x (W [in,out] bf16, b [1,out] f32) then (w_row [1,64] bf16, b [1,1] f32).
    """
    batch, input_size = x.shape
    bm = _default_block_batch(batch) if block_batch is None else block_batch

    padded = pl.cdiv(batch, bm) * bm
    if padded != batch:
        x = jnp.pad(x, ((0, padded - batch), (0, 0)))

    flat = []
    for w, b in params:
        flat.extend([w, b])

    grid = (padded // bm,)

    x_spec = pl.BlockSpec((bm, input_size), lambda i: (i, 0))
    out_spec = pl.BlockSpec((bm, 1), lambda i: (i, 0))
    # Constant block index -> weights/biases are DMA'd once and stay resident.
    param_specs = [pl.BlockSpec(p.shape, lambda i: (0, 0)) for p in flat]

    # VMEM budget: params (double-buffered by the pipeline) + a few f32
    # activation slabs + double-buffered x/out blocks, with 2x headroom.
    param_bytes = sum(int(p.size) * p.dtype.itemsize for p in flat)
    max_width = max([input_size] + [w.shape[-1] for w, _ in params])
    act_bytes = 4 * bm * max_width * 4
    io_bytes = 2 * (bm * input_size * 4 + bm * 4)
    vmem_limit = int(min(96 * 2**20,
                         max(8 * 2**20, 2 * (param_bytes + act_bytes + io_bytes))))

    out = pl.pallas_call(
        _mlp_kernel,
        out_shape=jax.ShapeDtypeStruct((padded, 1), jnp.float32),
        grid=grid,
        in_specs=[x_spec] + param_specs,
        out_specs=out_spec,
        compiler_params=pltpu.CompilerParams(
            dimension_semantics=("parallel",),   # v7x megacore over batch
            vmem_limit_bytes=vmem_limit),
    )(x, *flat)
    return out[:batch]


def init_params(key, input_size, hidden_size):
    """Deterministic synthetic init (not a checkpoint load)."""
    dims = [(input_size, hidden_size),
            (hidden_size, hidden_size),
            (hidden_size, 256),
            (256, 128),
            (128, 64),
            (64, 1)]
    params = []
    for li, (din, dout) in enumerate(dims):
        key, kw, kb = jax.random.split(key, 3)
        bound = 1.0 / jnp.sqrt(float(din))
        w = jax.random.uniform(kw, (din, dout), jnp.float32, -bound, bound)
        b = jax.random.uniform(kb, (1, dout), jnp.float32, -bound, bound)
        if li == len(dims) - 1:
            w = w.T                    # store final column as a [1, 64] row
        params.append((w.astype(jnp.bfloat16), b))
    return params


def reference_forward(x, params):
    """Pure-JAX reference matching the kernel's precision (bf16 MXU operands,
    f32 accumulation / bias / ReLU)."""
    h = x
    for w, b in params[:-1]:
        h = jnp.dot(h.astype(jnp.bfloat16), w,
                    preferred_element_type=jnp.float32) + b
        h = jnp.maximum(h, 0.0)
    w6, b6 = params[-1]                                   # [1, 64], [1, 1]
    return jnp.sum(h * w6.astype(jnp.float32), axis=-1, keepdims=True) + b6


if __name__ == "__main__":
    input_size = 32
    hidden_size = 32
    batch = 8

    key = jax.random.PRNGKey(0)
    key, kx = jax.random.split(key)
    x = jax.random.normal(kx, (batch, input_size), jnp.float32)
    params = init_params(key, input_size, hidden_size)

    out = simple_mlp_forward(x, params)
    out = jax.block_until_ready(out)

    ref = reference_forward(x, params)
    assert out.shape == (batch, 1)
    assert jnp.allclose(out, ref, atol=2e-3, rtol=2e-3), \
        float(jnp.max(jnp.abs(out - ref)))

    print("KERNEL_OK")
</pallas_src>

<mosaic_0001>
module attributes {stable_mosaic.version = 11 : i64} {
  func.func @_mlp_kernel(%arg0: i32, %arg1: memref<8x32xf32, #tpu.memory_space<vmem>>, %arg2: memref<32x32xbf16, #tpu.memory_space<vmem>>, %arg3: memref<1x32xf32, #tpu.memory_space<vmem>>, %arg4: memref<32x32xbf16, #tpu.memory_space<vmem>>, %arg5: memref<1x32xf32, #tpu.memory_space<vmem>>, %arg6: memref<32x256xbf16, #tpu.memory_space<vmem>>, %arg7: memref<1x256xf32, #tpu.memory_space<vmem>>, %arg8: memref<256x128xbf16, #tpu.memory_space<vmem>>, %arg9: memref<1x128xf32, #tpu.memory_space<vmem>>, %arg10: memref<128x64xbf16, #tpu.memory_space<vmem>>, %arg11: memref<1x64xf32, #tpu.memory_space<vmem>>, %arg12: memref<1x64xbf16, #tpu.memory_space<vmem>>, %arg13: memref<1x1xf32, #tpu.memory_space<vmem>>, %arg14: memref<8x1xf32, #tpu.memory_space<vmem>>) attributes {dimension_semantics = [#tpu.dimension_semantics<parallel>], iteration_bounds = array<i64: 1>, scalar_prefetch = 0 : i64, scratch_operands = 0 : i64, tpu.core_type = #tpu.core_type<tc>, window_params = [{transform_indices = @transform_0, window_bounds = array<i64: 8, 32>}, {pipeline_mode = #tpu.pipeline_mode<synchronous>, transform_indices = @transform_1, window_bounds = array<i64: 32, 32>}, {pipeline_mode = #tpu.pipeline_mode<synchronous>, transform_indices = @transform_2, window_bounds = array<i64: 1, 32>}, {pipeline_mode = #tpu.pipeline_mode<synchronous>, transform_indices = @transform_3, window_bounds = array<i64: 32, 32>}, {pipeline_mode = #tpu.pipeline_mode<synchronous>, transform_indices = @transform_4, window_bounds = array<i64: 1, 32>}, {pipeline_mode = #tpu.pipeline_mode<synchronous>, transform_indices = @transform_5, window_bounds = array<i64: 32, 256>}, {pipeline_mode = #tpu.pipeline_mode<synchronous>, transform_indices = @transform_6, window_bounds = array<i64: 1, 256>}, {pipeline_mode = #tpu.pipeline_mode<synchronous>, transform_indices = @transform_7, window_bounds = array<i64: 256, 128>}, {pipeline_mode = #tpu.pipeline_mode<synchronous>, transform_indices = @transform_8, window_bounds = array<i64: 1, 128>}, {pipeline_mode = #tpu.pipeline_mode<synchronous>, transform_indices = @transform_9, window_bounds = array<i64: 128, 64>}, {pipeline_mode = #tpu.pipeline_mode<synchronous>, transform_indices = @transform_10, window_bounds = array<i64: 1, 64>}, {pipeline_mode = #tpu.pipeline_mode<synchronous>, transform_indices = @transform_11, window_bounds = array<i64: 1, 64>}, {pipeline_mode = #tpu.pipeline_mode<synchronous>, transform_indices = @transform_12, window_bounds = array<i64: 1, 1>}, {transform_indices = @transform_13, window_bounds = array<i64: 8, 1>}]} {
    %c0 = arith.constant 0 : index
    %c0_0 = arith.constant 0 : index
    %0 = vector.load %arg1[%c0, %c0_0] : memref<8x32xf32, #tpu.memory_space<vmem>>, vector<8x32xf32>
    %1 = arith.truncf %0 : vector<8x32xf32> to vector<8x32xbf16>
    %c0_1 = arith.constant 0 : index
    %c0_2 = arith.constant 0 : index
    %2 = vector.load %arg2[%c0_1, %c0_2] : memref<32x32xbf16, #tpu.memory_space<vmem>>, vector<32x32xbf16>
    %cst = arith.constant dense<0.000000e+00> : vector<8x32xf32>
    %3 = tpu.matmul %1, %2, %cst {dimension_numbers = #tpu.dot_dimension_numbers<[1], [0], [0], [1], [0, 0, 1, 1], [], []>} : vector<8x32xbf16>, vector<32x32xbf16>, vector<8x32xf32> -> vector<8x32xf32>
    %c0_3 = arith.constant 0 : index
    %c0_4 = arith.constant 0 : index
    %4 = vector.load %arg3[%c0_3, %c0_4] : memref<1x32xf32, #tpu.memory_space<vmem>>, vector<1x32xf32>
    %5 = vector.broadcast %4 : vector<1x32xf32> to vector<8x32xf32>
    %6 = arith.addf %3, %5 : vector<8x32xf32>
    %cst_5 = arith.constant 0.000000e+00 : f32
    %7 = vector.broadcast %cst_5 : f32 to vector<8x32xf32>
    %8 = arith.maximumf %6, %7 : vector<8x32xf32>
    %9 = arith.truncf %8 : vector<8x32xf32> to vector<8x32xbf16>
    %c0_6 = arith.constant 0 : index
    %c0_7 = arith.constant 0 : index
    %10 = vector.load %arg4[%c0_6, %c0_7] : memref<32x32xbf16, #tpu.memory_space<vmem>>, vector<32x32xbf16>
    %cst_8 = arith.constant dense<0.000000e+00> : vector<8x32xf32>
    %11 = tpu.matmul %9, %10, %cst_8 {dimension_numbers = #tpu.dot_dimension_numbers<[1], [0], [0], [1], [0, 0, 1, 1], [], []>} : vector<8x32xbf16>, vector<32x32xbf16>, vector<8x32xf32> -> vector<8x32xf32>
    %c0_9 = arith.constant 0 : index
    %c0_10 = arith.constant 0 : index
    %12 = vector.load %arg5[%c0_9, %c0_10] : memref<1x32xf32, #tpu.memory_space<vmem>>, vector<1x32xf32>
    %13 = vector.broadcast %12 : vector<1x32xf32> to vector<8x32xf32>
    %14 = arith.addf %11, %13 : vector<8x32xf32>
    %cst_11 = arith.constant 0.000000e+00 : f32
    %15 = vector.broadcast %cst_11 : f32 to vector<8x32xf32>
    %16 = arith.maximumf %14, %15 : vector<8x32xf32>
    %17 = arith.truncf %16 : vector<8x32xf32> to vector<8x32xbf16>
    %c0_12 = arith.constant 0 : index
    %c0_13 = arith.constant 0 : index
    %18 = vector.load %arg6[%c0_12, %c0_13] : memref<32x256xbf16, #tpu.memory_space<vmem>>, vector<32x256xbf16>
    %cst_14 = arith.constant dense<0.000000e+00> : vector<8x256xf32>
    %19 = tpu.matmul %17, %18, %cst_14 {dimension_numbers = #tpu.dot_dimension_numbers<[1], [0], [0], [1], [0, 0, 1, 1], [], []>} : vector<8x32xbf16>, vector<32x256xbf16>, vector<8x256xf32> -> vector<8x256xf32>
    %c0_15 = arith.constant 0 : index
    %c0_16 = arith.constant 0 : index
    %20 = vector.load %arg7[%c0_15, %c0_16] : memref<1x256xf32, #tpu.memory_space<vmem>>, vector<1x256xf32>
    %21 = vector.broadcast %20 : vector<1x256xf32> to vector<8x256xf32>
    %22 = arith.addf %19, %21 : vector<8x256xf32>
    %cst_17 = arith.constant 0.000000e+00 : f32
    %23 = vector.broadcast %cst_17 : f32 to vector<8x256xf32>
    %24 = arith.maximumf %22, %23 : vector<8x256xf32>
    %25 = arith.truncf %24 : vector<8x256xf32> to vector<8x256xbf16>
    %c0_18 = arith.constant 0 : index
    %c0_19 = arith.constant 0 : index
    %26 = vector.load %arg8[%c0_18, %c0_19] : memref<256x128xbf16, #tpu.memory_space<vmem>>, vector<256x128xbf16>
    %cst_20 = arith.constant dense<0.000000e+00> : vector<8x128xf32>
    %27 = tpu.matmul %25, %26, %cst_20 {dimension_numbers = #tpu.dot_dimension_numbers<[1], [0], [0], [1], [0, 0, 1, 1], [], []>} : vector<8x256xbf16>, vector<256x128xbf16>, vector<8x128xf32> -> vector<8x128xf32>
    %c0_21 = arith.constant 0 : index
    %c0_22 = arith.constant 0 : index
    %28 = vector.load %arg9[%c0_21, %c0_22] : memref<1x128xf32, #tpu.memory_space<vmem>>, vector<1x128xf32>
    %29 = vector.broadcast %28 : vector<1x128xf32> to vector<8x128xf32>
    %30 = arith.addf %27, %29 : vector<8x128xf32>
    %cst_23 = arith.constant 0.000000e+00 : f32
    %31 = vector.broadcast %cst_23 : f32 to vector<8x128xf32>
    %32 = arith.maximumf %30, %31 : vector<8x128xf32>
    %33 = arith.truncf %32 : vector<8x128xf32> to vector<8x128xbf16>
    %c0_24 = arith.constant 0 : index
    %c0_25 = arith.constant 0 : index
    %34 = vector.load %arg10[%c0_24, %c0_25] : memref<128x64xbf16, #tpu.memory_space<vmem>>, vector<128x64xbf16>
    %cst_26 = arith.constant dense<0.000000e+00> : vector<8x64xf32>
    %35 = tpu.matmul %33, %34, %cst_26 {dimension_numbers = #tpu.dot_dimension_numbers<[1], [0], [0], [1], [0, 0, 1, 1], [], []>} : vector<8x128xbf16>, vector<128x64xbf16>, vector<8x64xf32> -> vector<8x64xf32>
    %c0_27 = arith.constant 0 : index
    %c0_28 = arith.constant 0 : index
    %36 = vector.load %arg11[%c0_27, %c0_28] : memref<1x64xf32, #tpu.memory_space<vmem>>, vector<1x64xf32>
    %37 = vector.broadcast %36 : vector<1x64xf32> to vector<8x64xf32>
    %38 = arith.addf %35, %37 : vector<8x64xf32>
    %cst_29 = arith.constant 0.000000e+00 : f32
    %39 = vector.broadcast %cst_29 : f32 to vector<8x64xf32>
    %40 = arith.maximumf %38, %39 : vector<8x64xf32>
    %c0_30 = arith.constant 0 : index
    %c0_31 = arith.constant 0 : index
    %41 = vector.load %arg12[%c0_30, %c0_31] : memref<1x64xbf16, #tpu.memory_space<vmem>>, vector<1x64xbf16>
    %42 = arith.extf %41 : vector<1x64xbf16> to vector<1x64xf32>
    %43 = vector.broadcast %42 : vector<1x64xf32> to vector<8x64xf32>
    %44 = arith.mulf %40, %43 : vector<8x64xf32>
    %cst_32 = arith.constant dense<0.000000e+00> : vector<8xf32>
    %45 = vector.multi_reduction <add>, %44, %cst_32 [1] : vector<8x64xf32> to vector<8xf32>
    %46 = vector.shape_cast %45 : vector<8xf32> to vector<8x1xf32>
    %c0_33 = arith.constant 0 : index
    %c0_34 = arith.constant 0 : index
    %47 = vector.load %arg13[%c0_33, %c0_34] : memref<1x1xf32, #tpu.memory_space<vmem>>, vector<1x1xf32>
    %48 = vector.broadcast %47 : vector<1x1xf32> to vector<8x1xf32>
    %49 = arith.addf %46, %48 : vector<8x1xf32>
    %c0_35 = arith.constant 0 : index
    %c0_36 = arith.constant 0 : index
    %50 = vector.load %arg14[%c0_35, %c0_36] : memref<8x1xf32, #tpu.memory_space<vmem>>, vector<8x1xf32>
    tpu.vector_store %arg14[%c0_35, %c0_36], %49 {strides = array<i32>} : memref<8x1xf32, #tpu.memory_space<vmem>>, vector<8x1xf32>,
    return
  }
  func.func @transform_0(%arg0: i32) -> (i32, i32) {
    %c0_i32 = arith.constant 0 : i32
    %c0_i32_0 = arith.constant 0 : i32
    return %arg0, %c0_i32 : i32, i32
  }
  func.func @transform_1(%arg0: i32) -> (i32, i32) {
    %c0_i32 = arith.constant 0 : i32
    %c0_i32_0 = arith.constant 0 : i32
    %c0_i32_1 = arith.constant 0 : i32
    return %c0_i32, %c0_i32_0 : i32, i32
  }
  func.func @transform_2(%arg0: i32) -> (i32, i32) {
    %c0_i32 = arith.constant 0 : i32
    %c0_i32_0 = arith.constant 0 : i32
    %c0_i32_1 = arith.constant 0 : i32
    return %c0_i32, %c0_i32_0 : i32, i32
  }
  func.func @transform_3(%arg0: i32) -> (i32, i32) {
    %c0_i32 = arith.constant 0 : i32
    %c0_i32_0 = arith.constant 0 : i32
    %c0_i32_1 = arith.constant 0 : i32
    return %c0_i32, %c0_i32_0 : i32, i32
  }
  func.func @transform_4(%arg0: i32) -> (i32, i32) {
    %c0_i32 = arith.constant 0 : i32
    %c0_i32_0 = arith.constant 0 : i32
    %c0_i32_1 = arith.constant 0 : i32
    return %c0_i32, %c0_i32_0 : i32, i32
  }
  func.func @transform_5(%arg0: i32) -> (i32, i32) {
    %c0_i32 = arith.constant 0 : i32
    %c0_i32_0 = arith.constant 0 : i32
    %c0_i32_1 = arith.constant 0 : i32
    return %c0_i32, %c0_i32_0 : i32, i32
  }
  func.func @transform_6(%arg0: i32) -> (i32, i32) {
    %c0_i32 = arith.constant 0 : i32
    %c0_i32_0 = arith.constant 0 : i32
    %c0_i32_1 = arith.constant 0 : i32
    return %c0_i32, %c0_i32_0 : i32, i32
  }
  func.func @transform_7(%arg0: i32) -> (i32, i32) {
    %c0_i32 = arith.constant 0 : i32
    %c0_i32_0 = arith.constant 0 : i32
    %c0_i32_1 = arith.constant 0 : i32
    return %c0_i32, %c0_i32_0 : i32, i32
  }
  func.func @transform_8(%arg0: i32) -> (i32, i32) {
    %c0_i32 = arith.constant 0 : i32
    %c0_i32_0 = arith.constant 0 : i32
    %c0_i32_1 = arith.constant 0 : i32
    return %c0_i32, %c0_i32_0 : i32, i32
  }
  func.func @transform_9(%arg0: i32) -> (i32, i32) {
    %c0_i32 = arith.constant 0 : i32
    %c0_i32_0 = arith.constant 0 : i32
    %c0_i32_1 = arith.constant 0 : i32
    return %c0_i32, %c0_i32_0 : i32, i32
  }
  func.func @transform_10(%arg0: i32) -> (i32, i32) {
    %c0_i32 = arith.constant 0 : i32
    %c0_i32_0 = arith.constant 0 : i32
    %c0_i32_1 = arith.constant 0 : i32
    return %c0_i32, %c0_i32_0 : i32, i32
  }
  func.func @transform_11(%arg0: i32) -> (i32, i32) {
    %c0_i32 = arith.constant 0 : i32
    %c0_i32_0 = arith.constant 0 : i32
    %c0_i32_1 = arith.constant 0 : i32
    return %c0_i32, %c0_i32_0 : i32, i32
  }
  func.func @transform_12(%arg0: i32) -> (i32, i32) {
    %c0_i32 = arith.constant 0 : i32
    %c0_i32_0 = arith.constant 0 : i32
    %c0_i32_1 = arith.constant 0 : i32
    return %c0_i32, %c0_i32_0 : i32, i32
  }
  func.func @transform_13(%arg0: i32) -> (i32, i32) {
    %c0_i32 = arith.constant 0 : i32
    %c0_i32_0 = arith.constant 0 : i32
    return %arg0, %c0_i32 : i32, i32
  }
}

</mosaic_0001>

<bundles_post_ra>
// kernel: tpu_custom_call.1
= control target key start
LH: loop header
LB: loop body
LE: loop exit
PB: predicated region body
PF: predicated region fallthrough
CT: control target
= control target key end

     0   :  { %s949_s0 = inlined_call_operand.vmem [shape: f32[8,32], index: 0, kind: input, shape index: {}]   ;;  %s950_s1 = inlined_call_operand.vmem [shape: bf16[32,32], index: 1, kind: input, shape index: {}]   ;;  %s951_s2 = inlined_call_operand.vmem [shape: f32[1,32], index: 2, kind: input, shape index: {}]   ;;  %s952_s3 = inlined_call_operand.vmem [shape: bf16[32,32], index: 3, kind: input, shape index: {}]   ;;  %s953_s4 = inlined_call_operand.vmem [shape: f32[1,32], index: 4, kind: input, shape index: {}]   ;;  %s954_s5 = inlined_call_operand.vmem [shape: bf16[32,256], index: 5, kind: input, shape index: {}]   ;;  %s955_s6 = inlined_call_operand.vmem [shape: f32[1,256], index: 6, kind: input, shape index: {}]   ;;  %s956_s7 = inlined_call_operand.hbm [shape: bf16[256,128], index: 7, kind: input, shape index: {}]   ;;  %s957_s8 = inlined_call_operand.vmem [shape: f32[1,128], index: 8, kind: input, shape index: {}]   ;;  %s958_s9 = inlined_call_operand.vmem [shape: bf16[128,64], index: 9, kind: input, shape index: {}]   ;;  %s959_s10 = inlined_call_operand.vmem [shape: f32[1,64], index: 10, kind: input, shape index: {}]   ;;  %s960_s11 = inlined_call_operand.vmem [shape: bf16[1,64], index: 11, kind: input, shape index: {}]   ;;  %s961_s12 = inlined_call_operand.<no memory space> [shape: f32[1,1], index: 12, kind: input, shape index: {}]   ;;  %s962_s13 = inlined_call_operand.vmem [shape: f32[8,1], index: 13, kind: output, shape index: {}]  }
   0x1   :  { %v18_v0 = vstv %s961_s12 }
   0x2   :  { %19 = vst [vmem:[#allocation2] sm:$0x1] %v18_v0 }
   0x3   :  { %20 = vsyncpa [#allocation4], 0  ;;  %s774_s27 = smov [#allocation3]  }
   0x4   :  { %s40_s28 = sshll.u32 %s774_s27, 4  ;;  %s41_s28 = int_to_ptr.vmem [resolvable:$true] %s40_s28 }
   0x5   :  { %s760_s29 = scalar_lea.vmem %s41_s28, 2048  ;;  %p765_p1 = scmp.lt.s32.totalorder %s41_s28, %s41_s28 }
   0x6   :  { %p761_p0 = scmp.ne.s32.totalorder %s41_s28, %s760_s29  ;;  %p766_p2 = scmp.lt.s32.totalorder %s760_s29, %s760_s29 }
   0x8   :  { %p767_p3 = por %p766_p2, %p765_p1 }
   0xa   :  { %p768_p4 = pnand %p767_p3, %p761_p0 }
   0xc   :  { %771 = shalt.err (!%p768_p4)
}
   0xd   :  { %s775_s30 = smov 64   ;;  %s776_s14 = smov 4  }
   0xe   :  { %46 = dma.hbm_to_vmem [thread:$0]  %s956_s7, 2048, %s41_s28, [#allocation4], %s775_s30, %s775_s30, %s776_s14  }
   0xf   :  { %772 = dma.done.wait [#allocation4], 2048  }
  0x10   :  { %773 = vsyncadd [#allocation4], 4294965248  ;;  %v777_v1 = vmov 0.0   ;;  %vm778_vm0 = vmmov 0   ;;  %v718_v2 = vld [vmem:[%s950_s1 + $0x8] sm:$0xff]   ;;  %v719_v3 = vld [vmem:[%s950_s1] sm:$0xff]   ;;  %v206_v50 = vlaneseq }
  0x11   :  { %676 = vmatprep.subr.bf16.mxu0 %v777_v1  ;;  %680 = vmatprep.mubr.msk.bf16.mxu0 %vm778_vm0, %v777_v1  ;;  %v61_v4 = vld [vmem:[%s949_s0] sm:$0xff]  ;;  %vm86_vm1 = vcmask 261120   ;;  %v720_v6 = vld [vmem:[%s952_s3 + $0x8] sm:$0xff]   ;;  %v722_v8 = vld [vmem:[%s954_s5 + $0x10] ss:$8 sps:$4 sm:$0xff]   ;;  %v779_v20 = vmov 0  }
  0x12   :  { %684 = vmatprep.subr.bf16.mxu1 %v777_v1  ;;  %688 = vmatprep.mubr.msk.bf16.mxu1 %vm778_vm0, %v777_v1  ;;  %v62_v5 = vpack.c.bf16 %v61_v4, %v61_v4  ;;  %v721_v7 = vld [vmem:[%s952_s3] sm:$0xff]   ;;  %v724_v9 = vld [vmem:[%s954_s5 + $0x14] ss:$8 sps:$4 sm:$0xff]   ;;  %v732_v25 = vld [vmem:[#allocation3 + $0x68] sm:$0xff]   ;;  %v207_v51 = vshrl.u32 %v206_v50, 7  ;;  %vm580_vm2 = vcmask 523264  }
  0x13   :  { %677 = vmatpush3.bf16.msra.mxu0 %v718_v2  ;;  %685 = vmatpush3.bf16.msra.mxu1 %v720_v6  ;;  %v599_v10 = vld [vmem:[%s951_s2] ss:$0 sm:$0xff]  ;;  %v727_v18 = vld [vmem:[%s954_s5 + $0x4] ss:$8 sps:$4 sm:$0xff]   ;;  %v730_v23 = vld [vmem:[#allocation3 + $0x70] sm:$0xff]   ;;  %vm592_vm3 = vcmask 7168  }
  0x14   :  { %678 = vmatprep.subr.bf16.mxu0 %v777_v1  ;;  %686 = vmatprep.subr.bf16.mxu1 %v777_v1  ;;  %v725_v19 = vld [vmem:[%s954_s5] ss:$8 sps:$4 sm:$0xff]   ;;  %v731_v24 = vld [vmem:[#allocation3 + $0x30] sm:$0xff]   ;;  %v208_v52 = vsub.s32 0, %v207_v51  ;;  %v212_v54 = vsub.s32 1, %v207_v51 }
  0x15   :  { %v728_v21 = vld [vmem:[#allocation3 + $0x78] sm:$0xff]   ;;  %v733_v26 = vld [vmem:[#allocation3 + $0x28] sm:$0xff]   ;;  %v734_v27 = vld [vmem:[#allocation3 + $0x60] sm:$0xff]  }
  0x16   :  { %v729_v22 = vld [vmem:[#allocation3 + $0x38] sm:$0xff]   ;;  %v735_v28 = vld [vmem:[#allocation3 + $0x20] sm:$0xff]   ;;  %v738_v31 = vld [vmem:[#allocation3 + $0x50] sm:$0xff]  }
  0x17   :  { %679 = vmatpush3.bf16.msra.mxu0 %v719_v3  ;;  %687 = vmatpush3.bf16.msra.mxu1 %v721_v7  ;;  %v736_v29 = vld [vmem:[#allocation3 + $0x58] sm:$0xff]   ;;  %v739_v32 = vld [vmem:[#allocation3 + $0x10] sm:$0xff]   ;;  %v740_v41 = vld [vmem:[#allocation3 + $0x48] sm:$0xff]  }
  0x18   :  { %251 = vmatprep.subr.bf16.mxu0 %v724_v9  ;;  %645 = vmatprep.subr.bf16.mxu1 %v728_v21  ;;  %v737_v30 = vld [vmem:[#allocation3 + $0x18] sm:$0xff]   ;;  %v741_v42 = vld [vmem:[#allocation3 + $0x8] sm:$0xff]   ;;  %v742_v43 = vld [vmem:[#allocation3 + $0x40] sm:$0xff]  }
  0x19   :  { %v603_v33 = vld [vmem:[%s953_s4] ss:$0 sm:$0xff]  ;;  %v743_v44 = vld [vmem:[#allocation3] sm:$0xff]   ;;  %v744_v45 = vld [vmem:[%s958_s9 + $0x38] sm:$0xff]  }
  0x1a   :  { %681 = vmatmul.mubr.msk.bf16.vlgmr.msra.gmra.mxu0 %vm86_vm1, %v62_v5  ;;  %v745_v46 = vld [vmem:[%s958_s9 + $0x30] sm:$0xff]   ;;  %v746_v47 = vld [vmem:[%s958_s9 + $0x28] sm:$0xff]   ;;  %v747_v48 = vld [vmem:[%s958_s9 + $0x20] sm:$0xff]  }
  0x1b   :  { %252 = vmatpush1.bf16.msra.mxu0 %v722_v8  ;;  %271 = vmatprep.mubr.bf16.mxu0 %v779_v20  ;;  %v748_v49 = vld [vmem:[%s958_s9 + $0x18] sm:$0xff]   ;;  %v204_v53 = vld [vmem:[%s955_s6] sm:$0x3]  ;;  %v749_v4 = vld [vmem:[%s958_s9 + $0x10] sm:$0xff]  }
  0x1c   :  { %253 = vmatprep.subr.bf16.mxu0 %v727_v18  ;;  %v209_v55 = vrot.slane %v204_v53, %v208_v52  ;;  %v213_v56 = vrot.slane %v204_v53, %v212_v54  ;;  %v750_v5 = vld [vmem:[%s958_s9 + $0x8] sm:$0xff]   ;;  %v751_v6 = vld [vmem:[%s958_s9] sm:$0xff]  }
  0x1d   :  { %v612_v8 = vld [vmem:[%s957_s8] ss:$0 sm:$0xff] }
  0x1f   :  { %254 = vmatpush1.bf16.msra.mxu0 %v725_v19 }
  0x20   :  { %692 = vmatprep.subr.bf16.mxu0 %v777_v1 }
  0xda   :  { %v124_v11 = vpop.f32.mrf.mxu0 }
  0xdb   :  { %v125_v12 = vadd.f32 %v599_v10, %v124_v11 }
  0xdc   :  { %v682_v13 = vpop.f32.mrf.mxu0 }
  0xdd   :  { %v130_v14 = vmax.f32 %v125_v12, 0.0 }
  0xde   :  { %v127_v15 = vpop.f32.mrf.mxu0 }
  0xdf   :  { %v131_v16 = vpack.c.bf16 %v130_v14, %v130_v14 }
  0xe0   :  { %v683_v17 = vpop.f32.mrf.mxu0 }
  0xe1   :  { %689 = vmatmul.mubr.msk.bf16.vlgmr.msra.gmra.mxu1 %vm86_vm1, %v131_v16  ;;  %v629_v17 = vld [vmem:[%s959_s10] ss:$0 sm:$0xff] }
  0xe2   :  { %646 = vmatpush3.bf16.msra.mxu1 %v729_v22 }
  0xe3   :  { %647 = vmatprep.subr.bf16.mxu1 %v730_v23 }
  0xe6   :  { %648 = vmatpush3.bf16.msra.mxu1 %v731_v24 }
  0xe7   :  { %649 = vmatprep.subr.bf16.mxu1 %v732_v25 }
  0xea   :  { %650 = vmatpush3.bf16.msra.mxu1 %v733_v26 }
  0xeb   :  { %651 = vmatprep.subr.bf16.mxu1 %v734_v27  ;;  %v638_v27 = vld [vmem:[#allocation2] ss:$0 sm:$0xff] }
  0xee   :  { %652 = vmatpush3.bf16.msra.mxu1 %v735_v28 }
  0xef   :  { %653 = vmatprep.subr.bf16.mxu1 %v736_v29 }
  0xf2   :  { %654 = vmatpush3.bf16.msra.mxu1 %v737_v30 }
  0xf3   :  { %655 = vmatprep.subr.bf16.mxu1 %v738_v31 }
  0xf6   :  { %656 = vmatpush3.bf16.msra.mxu1 %v739_v32 }
  0xf7   :  { %657 = vmatprep.subr.bf16.mxu1 %v740_v41 }
  0xfa   :  { %658 = vmatpush3.bf16.msra.mxu1 %v741_v42 }
  0xfb   :  { %659 = vmatprep.subr.bf16.mxu1 %v742_v43 }
  0xfe   :  { %660 = vmatpush3.bf16.msra.mxu1 %v743_v44 }
 0x1a1   :  { %v192_v34 = vpop.f32.mrf.mxu1 }
 0x1a2   :  { %v193_v35 = vadd.f32 %v603_v33, %v192_v34 }
 0x1a3   :  { %v690_v36 = vpop.f32.mrf.mxu1 }
 0x1a4   :  { %v198_v37 = vmax.f32 %v193_v35, 0.0 }
 0x1a5   :  { %v195_v38 = vpop.f32.mrf.mxu1 }
 0x1a6   :  { %v199_v39 = vpack.c.bf16 %v198_v37, %v198_v37 }
 0x1a7   :  { %v691_v40 = vpop.f32.mrf.mxu1 }
 0x1a8   :  { %611 = vmatmul.mubr.msk.bf16.vlgmr.msra.gmra.mxu0 %vm86_vm1, %v199_v39 }
 0x1a9   :  { %708 = vmatprep.mubr.msk.bf16.mxu0 %vm778_vm0, %v777_v1  ;;  %693 = vmatpush3.bf16.msra.mxu0 %v744_v45 }
 0x1aa   :  { %694 = vmatprep.subr.bf16.mxu0 %v777_v1 }
 0x1ad   :  { %695 = vmatpush3.bf16.msra.mxu0 %v745_v46 }
 0x1ae   :  { %696 = vmatprep.subr.bf16.mxu0 %v777_v1 }
 0x1b1   :  { %697 = vmatpush3.bf16.msra.mxu0 %v746_v47 }
 0x1b2   :  { %698 = vmatprep.subr.bf16.mxu0 %v777_v1 }
 0x1b5   :  { %699 = vmatpush3.bf16.msra.mxu0 %v747_v48 }
 0x1b6   :  { %700 = vmatprep.subr.bf16.mxu0 %v777_v1 }
 0x1b9   :  { %701 = vmatpush3.bf16.msra.mxu0 %v748_v49 }
 0x1ba   :  { %702 = vmatprep.subr.bf16.mxu0 %v777_v1 }
 0x1bd   :  { %703 = vmatpush3.bf16.msra.mxu0 %v749_v4 }
 0x1be   :  { %704 = vmatprep.subr.bf16.mxu0 %v777_v1 }
 0x1c1   :  { %705 = vmatpush3.bf16.msra.mxu0 %v750_v5 }
 0x1c2   :  { %706 = vmatprep.subr.bf16.mxu0 %v777_v1  ;;  %v573_v1 = vld [vmem:[%s960_s11] sm:$0x1] }
 0x1c3   :  { %v574_v16 = vunpack.c.l.bf16 %v573_v1 }
 0x1c5   :  { %707 = vmatpush3.bf16.msra.mxu0 %v751_v6  ;;  %v578_v20 = vrot.slane %v574_v16, %v208_v52 }
 0x268   :  { %v273_v57 = vpop.f32.mrf.mxu0 }
 0x269   :  { %v274_v58 = vadd.f32 %v273_v57, %v209_v55 }
 0x26a   :  { %v275_v59 = vpop.f32.mrf.mxu0 }
 0x26b   :  { %v276_v60 = vadd.f32 %v275_v59, %v213_v56  ;;  %v280_v61 = vmax.f32 %v274_v58, 0.0 }
 0x26c   :  { %v277_v62 = vpop.f32.mrf.mxu0 }
 0x26d   :  { %v281_v63 = vmax.f32 %v276_v60, 0.0  ;;  %v282_v3 = vpack.c.bf16 %v280_v61, %v280_v61 }
 0x26e   :  { %v278_v0 = vpop.f32.mrf.mxu0 }
 0x26f   :  { %v283_v2 = vpack.c.bf16 %v281_v63, %v281_v63 }
 0x271   :  { %451 = vmatprep.mubr.bf16.mxu1 %v283_v2 }
 0x272   :  { %452 = vmatmul.mubr.bf16.vlgmr.msra.gmra.mxu1 %v282_v3 }
 0x332   :  { %v661_v7 = vpop.f32.mrf.mxu1 }
 0x334   :  { %v662_v9 = vpop.f32.mrf.mxu1 }
 0x335   :  { %v663_v10 = vadd.f32 %v662_v9, %v661_v7 }
 0x336   :  { %v664_v11 = vpop.f32.mrf.mxu1 }
 0x337   :  { %v454_v12 = vadd.f32 %v663_v10, %v612_v8 }
 0x338   :  { %v665_v13 = vpop.f32.mrf.mxu1 }
 0x339   :  { %v459_v14 = vmax.f32 %v454_v12, 0.0 }
 0x33b   :  { %v460_v15 = vpack.c.bf16 %v459_v14, %v459_v14 }
 0x33d   :  { %709 = vmatmul.mubr.bf16.vlgmr.msra.gmra.mxu0 %v460_v15 }
 0x3fd   :  { %v566_v18 = vpop.f32.mrf.mxu0 }
 0x3fe   :  { %v567_v19 = vadd.f32 %v629_v17, %v566_v18 }
 0x3ff   :  { %v710_v21 = vpop.f32.mrf.mxu0 }
 0x400   :  { %v572_v22 = vmax.f32 %v567_v19, 0.0 }
 0x401   :  { %v569_v23 = vpop.f32.mrf.mxu0 }
 0x402   :  { %v579_v24 = vmul.f32 %v578_v20, %v572_v22 }
 0x403   :  { %v711_v25 = vpop.f32.mrf.mxu0 }
 0x404   :  { %v581_v26 = vsel %vm580_vm2, %v579_v24, 0.0 }
 0x405   :  { %582 = vadd.xlane.f32.xlu0 %v581_v26 }
 0x48e   :  { %v583_v28 = vpop.xlane.xlu0 %582 }
 0x48f   :  { %v591_v29 = vadd.f32 %v638_v27, %v583_v28 }
 0x491   :  { %593 = vst.msk [vmem:[%s962_s13] sm:$0xff] %vm592_vm3, %v591_v29 }
 0x492   :  { %598 = vsyncpa [#allocation4], 1 }

</bundles_post_ra>
